<compile_context>
chip_gen: v7x
topology: tpu7x:2x2x1
jax: 0.10.0
libtpu: 0.0.40
codegen_flags: <defaults>
</compile_context>

<pallas_src>
import jax
import jax.numpy as jnp
from jax.experimental import pallas as pl
from jax.experimental.pallas import tpu as pltpu


def _round_up(x, m):
    return (x + m - 1) // m * m


# ----------------------------------------------------------------------------
# Kernel
# ----------------------------------------------------------------------------
def _mlp_kernel(x_ref, w1_ref, b1_ref, w2_ref, b2_ref, wh_ref, bh_ref, out_ref):
    # x is bf16 raw pixel values (0..255); the /255 scale is folded into w1.
    x = x_ref[...]

    h1 = jnp.dot(x, w1_ref[...], preferred_element_type=jnp.float32) + b1_ref[...]
    h1 = jnp.maximum(h1, 0.0).astype(jnp.bfloat16)               # ReLU

    h2 = jnp.dot(h1, w2_ref[...], preferred_element_type=jnp.float32) + b2_ref[...]
    h2 = jnp.maximum(h2, 0.0).astype(jnp.bfloat16)               # ReLU

    # Fused (policy | value | zero-pad) head -> single lane-dense 128-wide store.
    out_ref[...] = (jnp.dot(h2, wh_ref[...], preferred_element_type=jnp.float32)
                    + bh_ref[...])


# ----------------------------------------------------------------------------
# Parameter prep (one-time transform of f32 params into kernel operands)
# ----------------------------------------------------------------------------
def prepare_params(params, num_outputs):
    w1 = (params["w1"] * (1.0 / 255.0)).astype(jnp.bfloat16)     # fold /255 into W1
    b1 = params["b1"].astype(jnp.float32)
    w2 = params["w2"].astype(jnp.bfloat16)
    b2 = params["b2"].astype(jnp.float32)

    h2_dim = params["w2"].shape[1]                               # 32
    head_n = _round_up(num_outputs + 1, 128)                     # pad to lane width
    wh = jnp.zeros((h2_dim, head_n), jnp.float32)
    wh = wh.at[:, :num_outputs].set(params["wp"])
    wh = wh.at[:, num_outputs:num_outputs + 1].set(params["wv"])
    bh = jnp.zeros((1, head_n), jnp.float32)
    bh = bh.at[:, :num_outputs].set(params["bp"])
    bh = bh.at[:, num_outputs:num_outputs + 1].set(params["bv"])

    return dict(w1=w1, b1=b1, w2=w2, b2=b2,
                wh=wh.astype(jnp.bfloat16), bh=bh)


# ----------------------------------------------------------------------------
# Forward wrapper
# ----------------------------------------------------------------------------
def simple_mlp_forward(obs_nchw, kparams, num_outputs):
    """obs_nchw: (B, C, H, W) uint8 or float raw obs. Returns (policy, value_flat)."""
    B = obs_nchw.shape[0]
    # nn.Flatten(start_dim=1); keep the input narrow: bf16 is exact for 0..255
    # integer pixels and halves HBM traffic vs f32.
    x = obs_nchw.reshape(B, -1).astype(jnp.bfloat16)
    D = x.shape[1]

    w1, b1, w2, b2, wh, bh = (kparams[k] for k in ("w1", "b1", "w2", "b2", "wh", "bh"))
    H1, H2, HN = w1.shape[1], w2.shape[1], wh.shape[1]

    # Batch tile: large enough for pipelining & full MXU occupancy, multiple of
    # 32 so every supported input dtype's sublane packing is satisfied.
    if B >= 512:
        TB = 512
    elif B >= 256:
        TB = 256
    else:
        TB = _round_up(B, 32)
    B_pad = _round_up(B, TB)
    if B_pad != B:
        x = jnp.pad(x, ((0, B_pad - B), (0, 0)))
    n_tiles = pl.cdiv(B_pad, TB)

    cost = pl.CostEstimate(
        flops=2 * B_pad * (D * H1 + H1 * H2 + H2 * HN),
        transcendentals=0,
        bytes_accessed=(B_pad * D * x.dtype.itemsize
                        + (w1.size + w2.size + wh.size) * 2
                        + (b1.size + b2.size + bh.size) * 4
                        + B_pad * HN * 4),
    )

    out = pl.pallas_call(
        _mlp_kernel,
        grid=(n_tiles,),
        in_specs=[
            pl.BlockSpec((TB, D), lambda i: (i, 0)),     # x: tiled over batch
            pl.BlockSpec((D, H1), lambda i: (0, 0)),     # weights/biases: resident
            pl.BlockSpec((1, H1), lambda i: (0, 0)),
            pl.BlockSpec((H1, H2), lambda i: (0, 0)),
            pl.BlockSpec((1, H2), lambda i: (0, 0)),
            pl.BlockSpec((H2, HN), lambda i: (0, 0)),
            pl.BlockSpec((1, HN), lambda i: (0, 0)),
        ],
        out_specs=pl.BlockSpec((TB, HN), lambda i: (i, 0)),
        out_shape=jax.ShapeDtypeStruct((B_pad, HN), jnp.float32),
        compiler_params=pltpu.CompilerParams(
            dimension_semantics=("parallel",),           # megacore on v7x
            vmem_limit_bytes=32 << 20,
        ),
        cost_estimate=cost,
    )(x, w1, b1, w2, b2, wh, bh)

    policy = out[:B, :num_outputs]
    value = out[:B, num_outputs]                          # value_function() flattens
    return policy, value


# ----------------------------------------------------------------------------
# Params / references
# ----------------------------------------------------------------------------
def init_params(key, obs_dim, num_outputs):
    """Deterministic synthetic f32 parameters, stored as (in, out) = PyTorch weight.T."""
    ks = jax.random.split(key, 8)

    def lin(kw, kb, din, dout):
        bound = 1.0 / jnp.sqrt(din)
        w = jax.random.uniform(kw, (din, dout), jnp.float32, -bound, bound)
        b = jax.random.uniform(kb, (1, dout), jnp.float32, -bound, bound)
        return w, b

    w1, b1 = lin(ks[0], ks[1], obs_dim, 128)
    w2, b2 = lin(ks[2], ks[3], 128, 32)
    wp, bp = lin(ks[4], ks[5], 32, num_outputs)
    wv, bv = lin(ks[6], ks[7], 32, 1)
    return dict(w1=w1, b1=b1, w2=w2, b2=b2, wp=wp, bp=bp, wv=wv, bv=bv)


def reference_forward_f32(obs_nchw, params):
    """Original PyTorch-module semantics in pure f32 JAX."""
    x = obs_nchw.reshape(obs_nchw.shape[0], -1).astype(jnp.float32) / 255.0
    h1 = jnp.maximum(x @ params["w1"] + params["b1"], 0.0)
    h2 = jnp.maximum(h1 @ params["w2"] + params["b2"], 0.0)
    return (h2 @ params["wp"] + params["bp"],
            (h2 @ params["wv"] + params["bv"]).reshape(-1))


def reference_forward_matched(obs_nchw, kparams, num_outputs):
    """Pure-JAX forward using the *same* bf16 kernel operands (tight check)."""
    x = obs_nchw.reshape(obs_nchw.shape[0], -1).astype(jnp.bfloat16)
    h1 = jnp.maximum(jnp.dot(x, kparams["w1"], preferred_element_type=jnp.float32)
                     + kparams["b1"], 0.0).astype(jnp.bfloat16)
    h2 = jnp.maximum(jnp.dot(h1, kparams["w2"], preferred_element_type=jnp.float32)
                     + kparams["b2"], 0.0).astype(jnp.bfloat16)
    out = jnp.dot(h2, kparams["wh"], preferred_element_type=jnp.float32) + kparams["bh"]
    return out[:, :num_outputs], out[:, num_outputs]


# ----------------------------------------------------------------------------
# Test
# ----------------------------------------------------------------------------
if __name__ == "__main__":
    key = jax.random.PRNGKey(0)
    k_obs, k_params = jax.random.split(key)

    # Small image-like obs (B, C, H, W); uint8 pixels like a typical RL obs.
    B, C, H, W = 2, 4, 16, 16
    num_outputs = 8
    obs_dim = C * H * W          # 1024

    obs = jax.random.randint(k_obs, (B, C, H, W), 0, 256, jnp.int32).astype(jnp.uint8)

    params = init_params(k_params, obs_dim, num_outputs)
    kparams = prepare_params(params, num_outputs)

    policy, value = simple_mlp_forward(obs, kparams, num_outputs)
    jax.block_until_ready((policy, value))

    assert policy.shape == (B, num_outputs)
    assert value.shape == (B,)

    # Tight check against a pure-JAX forward with identical bf16 operands.
    ref_p, ref_v = reference_forward_matched(obs, kparams, num_outputs)
    assert jnp.allclose(policy, ref_p, atol=1e-3, rtol=1e-3)
    assert jnp.allclose(value, ref_v, atol=1e-3, rtol=1e-3)

    # Looser check against the original f32 module semantics (bf16 weight rounding).
    ref_p32, ref_v32 = reference_forward_f32(obs, params)
    assert jnp.allclose(policy, ref_p32, atol=5e-2, rtol=5e-2)
    assert jnp.allclose(value, ref_v32, atol=5e-2, rtol=5e-2)

    print("KERNEL_OK")
</pallas_src>

<mosaic_0001>
module attributes {stable_mosaic.version = 11 : i64} {
  func.func @_mlp_kernel(%arg0: i32, %arg1: memref<32x1024xbf16, #tpu.memory_space<vmem>>, %arg2: memref<1024x128xbf16, #tpu.memory_space<vmem>>, %arg3: memref<1x128xf32, #tpu.memory_space<vmem>>, %arg4: memref<128x32xbf16, #tpu.memory_space<vmem>>, %arg5: memref<1x32xf32, #tpu.memory_space<vmem>>, %arg6: memref<32x128xbf16, #tpu.memory_space<vmem>>, %arg7: memref<1x128xf32, #tpu.memory_space<vmem>>, %arg8: memref<32x128xf32, #tpu.memory_space<vmem>>) attributes {dimension_semantics = [#tpu.dimension_semantics<parallel>], iteration_bounds = array<i64: 1>, scalar_prefetch = 0 : i64, scratch_operands = 0 : i64, tpu.core_type = #tpu.core_type<tc>, window_params = [{transform_indices = @transform_0, window_bounds = array<i64: 32, 1024>}, {pipeline_mode = #tpu.pipeline_mode<synchronous>, transform_indices = @transform_1, window_bounds = array<i64: 1024, 128>}, {pipeline_mode = #tpu.pipeline_mode<synchronous>, transform_indices = @transform_2, window_bounds = array<i64: 1, 128>}, {pipeline_mode = #tpu.pipeline_mode<synchronous>, transform_indices = @transform_3, window_bounds = array<i64: 128, 32>}, {pipeline_mode = #tpu.pipeline_mode<synchronous>, transform_indices = @transform_4, window_bounds = array<i64: 1, 32>}, {pipeline_mode = #tpu.pipeline_mode<synchronous>, transform_indices = @transform_5, window_bounds = array<i64: 32, 128>}, {pipeline_mode = #tpu.pipeline_mode<synchronous>, transform_indices = @transform_6, window_bounds = array<i64: 1, 128>}, {transform_indices = @transform_7, window_bounds = array<i64: 32, 128>}]} {
    %c0 = arith.constant 0 : index
    %c0_0 = arith.constant 0 : index
    %0 = vector.load %arg1[%c0, %c0_0] : memref<32x1024xbf16, #tpu.memory_space<vmem>>, vector<32x1024xbf16>
    %c0_1 = arith.constant 0 : index
    %c0_2 = arith.constant 0 : index
    %1 = vector.load %arg2[%c0_1, %c0_2] : memref<1024x128xbf16, #tpu.memory_space<vmem>>, vector<1024x128xbf16>
    %cst = arith.constant dense<0.000000e+00> : vector<32x128xf32>
    %2 = tpu.matmul %0, %1, %cst {dimension_numbers = #tpu.dot_dimension_numbers<[1], [0], [0], [1], [0, 0, 1, 1], [], []>} : vector<32x1024xbf16>, vector<1024x128xbf16>, vector<32x128xf32> -> vector<32x128xf32>
    %c0_3 = arith.constant 0 : index
    %c0_4 = arith.constant 0 : index
    %3 = vector.load %arg3[%c0_3, %c0_4] : memref<1x128xf32, #tpu.memory_space<vmem>>, vector<1x128xf32>
    %4 = vector.broadcast %3 : vector<1x128xf32> to vector<32x128xf32>
    %5 = arith.addf %2, %4 : vector<32x128xf32>
    %cst_5 = arith.constant 0.000000e+00 : f32
    %6 = vector.broadcast %cst_5 : f32 to vector<32x128xf32>
    %7 = arith.maximumf %5, %6 : vector<32x128xf32>
    %8 = arith.truncf %7 : vector<32x128xf32> to vector<32x128xbf16>
    %c0_6 = arith.constant 0 : index
    %c0_7 = arith.constant 0 : index
    %9 = vector.load %arg4[%c0_6, %c0_7] : memref<128x32xbf16, #tpu.memory_space<vmem>>, vector<128x32xbf16>
    %cst_8 = arith.constant dense<0.000000e+00> : vector<32x32xf32>
    %10 = tpu.matmul %8, %9, %cst_8 {dimension_numbers = #tpu.dot_dimension_numbers<[1], [0], [0], [1], [0, 0, 1, 1], [], []>} : vector<32x128xbf16>, vector<128x32xbf16>, vector<32x32xf32> -> vector<32x32xf32>
    %c0_9 = arith.constant 0 : index
    %c0_10 = arith.constant 0 : index
    %11 = vector.load %arg5[%c0_9, %c0_10] : memref<1x32xf32, #tpu.memory_space<vmem>>, vector<1x32xf32>
    %12 = vector.broadcast %11 : vector<1x32xf32> to vector<32x32xf32>
    %13 = arith.addf %10, %12 : vector<32x32xf32>
    %cst_11 = arith.constant 0.000000e+00 : f32
    %14 = vector.broadcast %cst_11 : f32 to vector<32x32xf32>
    %15 = arith.maximumf %13, %14 : vector<32x32xf32>
    %16 = arith.truncf %15 : vector<32x32xf32> to vector<32x32xbf16>
    %c0_12 = arith.constant 0 : index
    %c0_13 = arith.constant 0 : index
    %17 = vector.load %arg6[%c0_12, %c0_13] : memref<32x128xbf16, #tpu.memory_space<vmem>>, vector<32x128xbf16>
    %cst_14 = arith.constant dense<0.000000e+00> : vector<32x128xf32>
    %18 = tpu.matmul %16, %17, %cst_14 {dimension_numbers = #tpu.dot_dimension_numbers<[1], [0], [0], [1], [0, 0, 1, 1], [], []>} : vector<32x32xbf16>, vector<32x128xbf16>, vector<32x128xf32> -> vector<32x128xf32>
    %c0_15 = arith.constant 0 : index
    %c0_16 = arith.constant 0 : index
    %19 = vector.load %arg7[%c0_15, %c0_16] : memref<1x128xf32, #tpu.memory_space<vmem>>, vector<1x128xf32>
    %20 = vector.broadcast %19 : vector<1x128xf32> to vector<32x128xf32>
    %21 = arith.addf %18, %20 : vector<32x128xf32>
    %c0_17 = arith.constant 0 : index
    %c0_18 = arith.constant 0 : index
    %22 = vector.load %arg8[%c0_17, %c0_18] : memref<32x128xf32, #tpu.memory_space<vmem>>, vector<32x128xf32>
    tpu.vector_store %arg8[%c0_17, %c0_18], %21 {strides = array<i32>} : memref<32x128xf32, #tpu.memory_space<vmem>>, vector<32x128xf32>,
    return
  }
  func.func @transform_0(%arg0: i32) -> (i32, i32) {
    %c0_i32 = arith.constant 0 : i32
    %c0_i32_0 = arith.constant 0 : i32
    return %arg0, %c0_i32 : i32, i32
  }
  func.func @transform_1(%arg0: i32) -> (i32, i32) {
    %c0_i32 = arith.constant 0 : i32
    %c0_i32_0 = arith.constant 0 : i32
    %c0_i32_1 = arith.constant 0 : i32
    return %c0_i32, %c0_i32_0 : i32, i32
  }
  func.func @transform_2(%arg0: i32) -> (i32, i32) {
    %c0_i32 = arith.constant 0 : i32
    %c0_i32_0 = arith.constant 0 : i32
    %c0_i32_1 = arith.constant 0 : i32
    return %c0_i32, %c0_i32_0 : i32, i32
  }
  func.func @transform_3(%arg0: i32) -> (i32, i32) {
    %c0_i32 = arith.constant 0 : i32
    %c0_i32_0 = arith.constant 0 : i32
    %c0_i32_1 = arith.constant 0 : i32
    return %c0_i32, %c0_i32_0 : i32, i32
  }
  func.func @transform_4(%arg0: i32) -> (i32, i32) {
    %c0_i32 = arith.constant 0 : i32
    %c0_i32_0 = arith.constant 0 : i32
    %c0_i32_1 = arith.constant 0 : i32
    return %c0_i32, %c0_i32_0 : i32, i32
  }
  func.func @transform_5(%arg0: i32) -> (i32, i32) {
    %c0_i32 = arith.constant 0 : i32
    %c0_i32_0 = arith.constant 0 : i32
    %c0_i32_1 = arith.constant 0 : i32
    return %c0_i32, %c0_i32_0 : i32, i32
  }
  func.func @transform_6(%arg0: i32) -> (i32, i32) {
    %c0_i32 = arith.constant 0 : i32
    %c0_i32_0 = arith.constant 0 : i32
    %c0_i32_1 = arith.constant 0 : i32
    return %c0_i32, %c0_i32_0 : i32, i32
  }
  func.func @transform_7(%arg0: i32) -> (i32, i32) {
    %c0_i32 = arith.constant 0 : i32
    %c0_i32_0 = arith.constant 0 : i32
    return %arg0, %c0_i32 : i32, i32
  }
}

</mosaic_0001>

<bundles_post_ra>
// kernel: tpu_custom_call.1
= control target key start
LH: loop header
LB: loop body
LE: loop exit
PB: predicated region body
PF: predicated region fallthrough
CT: control target
= control target key end

     0   :  { %12 = vsyncpa [#allocation3], 0  ;;  %s1628_s0 = inlined_call_operand.hbm [shape: bf16[32,1024], index: 0, kind: input, shape index: {}]   ;;  %s1629_s1 = inlined_call_operand.hbm [shape: bf16[1024,128], index: 1, kind: input, shape index: {}]   ;;  %s1630_s2 = inlined_call_operand.vmem [shape: f32[1,128], index: 2, kind: input, shape index: {}]   ;;  %s1631_s3 = inlined_call_operand.vmem [shape: bf16[128,32], index: 3, kind: input, shape index: {}]   ;;  %s1632_s4 = inlined_call_operand.vmem [shape: f32[1,32], index: 4, kind: input, shape index: {}]   ;;  %s1633_s5 = inlined_call_operand.vmem [shape: bf16[32,128], index: 5, kind: input, shape index: {}]   ;;  %s1634_s6 = inlined_call_operand.vmem [shape: f32[1,128], index: 6, kind: input, shape index: {}]   ;;  %s1635_s7 = inlined_call_operand.hbm [shape: f32[32,128], index: 7, kind: output, shape index: {}]  }
   0x1   :  { %13 = vsyncpa [#allocation6], 0 }
   0x2   :  { %14 = vsyncpa [#allocation4], 0  ;;  %s1504_s24 = smov [#allocation2]   ;;  %s1432_s28 = scalar_lea.hbm %s1628_s0, 2048 }
   0x3   :  { %s20_s25 = sshll.u32 %s1504_s24, 4  ;;  %p1433_p0 = scmp.ne.s32.totalorder %s1628_s0, %s1432_s28  ;;  %s21_s25 = int_to_ptr.vmem [resolvable:$true] %s20_s25 }
   0x4   :  { %p1436_p1 = scmp.lt.u32.totalorder %s1432_s28, %s1628_s0 }
   0x6   :  { %p1438_p2 = pnand %p1436_p1, %p1433_p0 }
   0x8   :  { %1441 = shalt.err (!%p1438_p2)
}
   0x9   :  { %s1442_s10 = scalar_lea.vmem %s21_s25, 2048  ;;  %p1447_p4 = scmp.lt.s32.totalorder %s21_s25, %s21_s25 }
   0xa   :  { %p1443_p3 = scmp.ne.s32.totalorder %s21_s25, %s1442_s10  ;;  %p1448_p5 = scmp.lt.s32.totalorder %s1442_s10, %s1442_s10 }
   0xc   :  { %p1449_p6 = por %p1448_p5, %p1447_p4 }
   0xe   :  { %p1450_p7 = pnand %p1449_p6, %p1443_p3 }
  0x10   :  { %1453 = shalt.err (!%p1450_p7)
}
  0x11   :  { %s1505_s11 = smov 512   ;;  %s1506_s12 = smov 32  }
  0x12   :  { %26 = dma.hbm_to_vmem [thread:$0]  %s1628_s0, 2048, %s21_s25, [#allocation3], %s1505_s11, %s1505_s11, %s1506_s12  }
  0x13   :  { %s1507_s15 = smov [#allocation5]   ;;  %s1454_s19 = scalar_lea.hbm %s1629_s1, 8192 }
  0x14   :  { %s32_s16 = sshll.u32 %s1507_s15, 4  ;;  %p1455_p8 = scmp.ne.s32.totalorder %s1629_s1, %s1454_s19  ;;  %s33_s16 = int_to_ptr.vmem [resolvable:$true] %s32_s16 }
  0x15   :  { %p1458_p9 = scmp.lt.u32.totalorder %s1454_s19, %s1629_s1 }
  0x17   :  { %p1460_p10 = pnand %p1458_p9, %p1455_p8 }
  0x19   :  { %1463 = shalt.err (!%p1460_p10)
}
  0x1a   :  { %s1464_s24 = scalar_lea.vmem %s33_s16, 8192  ;;  %p1469_p12 = scmp.lt.s32.totalorder %s33_s16, %s33_s16 }
  0x1b   :  { %p1465_p11 = scmp.ne.s32.totalorder %s33_s16, %s1464_s24  ;;  %p1470_p13 = scmp.lt.s32.totalorder %s1464_s24, %s1464_s24 }
  0x1d   :  { %p1471_p0 = por %p1470_p13, %p1469_p12 }
  0x1f   :  { %p1472_p1 = pnand %p1471_p0, %p1465_p11 }
  0x21   :  { %1475 = shalt.err (!%p1472_p1)
}
  0x22   :  { %s1508_s0 = smov 64   ;;  %s1509_s25 = smov 4  }
  0x23   :  { %38 = dma.hbm_to_vmem [thread:$0]  %s1629_s1, 8192, %s33_s16, [#allocation6], %s1508_s0, %s1508_s0, %s1509_s25  }
  0x24   :  { %1498 = dma.done.wait [#allocation3], 2048  }
  0x25   :  { %1499 = vsyncadd [#allocation3], 4294965248 }
  0x26   :  { %1500 = dma.done.wait [#allocation6], 8192  }
  0x27   :  { %1501 = vsyncadd [#allocation6], 4294959104  ;;  %v1358_v0 = vld [vmem:[#allocation5 + $0x40] sm:$0xff]   ;;  %v1362_v4 = vld [vmem:[#allocation5 + $0x48] sm:$0xff]   ;;  %vm1022_vm0 = vcmask 261120  }
  0x28   :  { %v1359_v1 = vld [vmem:[#allocation5 + $0xc0] sm:$0xff]   ;;  %1195 = vmatprep.subr.bf16.mxu0 %v1358_v0  ;;  %v1363_v5 = vld [vmem:[#allocation5 + $0xc8] sm:$0xff]   ;;  %v1366_v8 = vld [vmem:[#allocation5 + $0x50] sm:$0xff]  }
  0x29   :  { %v1360_v2 = vld [vmem:[#allocation5] sm:$0xff]   ;;  %1223 = vmatprep.subr.bf16.mxu1 %v1359_v1  ;;  %v1364_v6 = vld [vmem:[#allocation5 + $0x8] sm:$0xff]   ;;  %v1367_v9 = vld [vmem:[#allocation5 + $0xd0] sm:$0xff]  }
  0x2a   :  { %v1361_v3 = vld [vmem:[#allocation5 + $0x80] sm:$0xff]   ;;  %1196 = vmatpush3.bf16.msra.mxu0 %v1360_v2  ;;  %v1365_v7 = vld [vmem:[#allocation5 + $0x88] sm:$0xff]   ;;  %v1368_v10 = vld [vmem:[#allocation5 + $0x10] sm:$0xff]  }
  0x2b   :  { %1224 = vmatpush3.bf16.msra.mxu1 %v1361_v3  ;;  %1197 = vmatprep.subr.bf16.mxu0 %v1362_v4  ;;  %v1369_v11 = vld [vmem:[#allocation5 + $0x90] sm:$0xff]   ;;  %v1370_v12 = vld [vmem:[#allocation5 + $0x58] sm:$0xff]   ;;  %v1374_v16 = vld [vmem:[#allocation5 + $0x60] sm:$0xff]  }
  0x2c   :  { %1225 = vmatprep.subr.bf16.mxu1 %v1363_v5  ;;  %v1371_v13 = vld [vmem:[#allocation5 + $0xd8] sm:$0xff]   ;;  %v1375_v17 = vld [vmem:[#allocation5 + $0xe0] sm:$0xff]   ;;  %v1378_v20 = vld [vmem:[#allocation5 + $0x68] sm:$0xff]  }
  0x2d   :  { %v1372_v14 = vld [vmem:[#allocation5 + $0x18] sm:$0xff]   ;;  %v1376_v18 = vld [vmem:[#allocation5 + $0x20] sm:$0xff]   ;;  %v1379_v21 = vld [vmem:[#allocation5 + $0xe8] sm:$0xff]  }
  0x2e   :  { %1198 = vmatpush3.bf16.msra.mxu0 %v1364_v6  ;;  %v1373_v15 = vld [vmem:[#allocation5 + $0x98] sm:$0xff]   ;;  %v1377_v19 = vld [vmem:[#allocation5 + $0xa0] sm:$0xff]   ;;  %v1380_v22 = vld [vmem:[#allocation5 + $0x28] sm:$0xff]  }
  0x2f   :  { %1226 = vmatpush3.bf16.msra.mxu1 %v1365_v7  ;;  %1199 = vmatprep.subr.bf16.mxu0 %v1366_v8  ;;  %v1381_v23 = vld [vmem:[#allocation5 + $0xa8] sm:$0xff]   ;;  %v1382_v24 = vld [vmem:[#allocation5 + $0x70] sm:$0xff]   ;;  %v1386_v28 = vld [vmem:[#allocation5 + $0x78] sm:$0xff]  }
  0x30   :  { %1227 = vmatprep.subr.bf16.mxu1 %v1367_v9  ;;  %v1383_v25 = vld [vmem:[#allocation5 + $0xf0] sm:$0xff]   ;;  %v1387_v29 = vld [vmem:[#allocation5 + $0xf8] sm:$0xff]   ;;  %v56_v32 = vld [vmem:[#allocation2] sm:$0xff] }
  0x31   :  { %v1384_v26 = vld [vmem:[#allocation5 + $0x30] sm:$0xff]   ;;  %v1388_v30 = vld [vmem:[#allocation5 + $0x38] sm:$0xff]   ;;  %v60_v33 = vld [vmem:[#allocation2 + $0x20] sm:$0xff] }
  0x32   :  { %1200 = vmatpush3.bf16.msra.mxu0 %v1368_v10  ;;  %v1385_v27 = vld [vmem:[#allocation5 + $0xb0] sm:$0xff]   ;;  %v1389_v31 = vld [vmem:[#allocation5 + $0xb8] sm:$0xff]   ;;  %v57_v34 = vld [vmem:[#allocation2 + $0x8] sm:$0xff]  ;;  %v1101_v35 = vcombine.low %v56_v32, %v60_v33  ;;  %v1102_v36 = vcombine.high %v56_v32, %v60_v33 }
  0x33   :  { %1228 = vmatpush3.bf16.msra.mxu1 %v1369_v11  ;;  %1201 = vmatprep.subr.bf16.mxu0 %v1370_v12  ;;  %v61_v37 = vld [vmem:[#allocation2 + $0x28] sm:$0xff]  ;;  %v1390_v40 = vld [vmem:[#allocation5 + $0x140] sm:$0xff]   ;;  %v1398_v48 = vld [vmem:[#allocation5 + $0x150] sm:$0xff]  }
  0x34   :  { %1229 = vmatprep.subr.bf16.mxu1 %v1371_v13  ;;  %v1103_v38 = vcombine.low %v57_v34, %v61_v37  ;;  %v1104_v39 = vcombine.high %v57_v34, %v61_v37  ;;  %703 = vmatprep.mubr.bf16.mxu0 %v1102_v36  ;;  %v1391_v41 = vld [vmem:[#allocation5 + $0x1c0] sm:$0xff]   ;;  %v1394_v44 = vld [vmem:[#allocation5 + $0x148] sm:$0xff]   ;;  %v1399_v49 = vld [vmem:[#allocation5 + $0x1d0] sm:$0xff]  }
  0x35   :  { %v1392_v42 = vld [vmem:[#allocation5 + $0x100] sm:$0xff]   ;;  %v1395_v45 = vld [vmem:[#allocation5 + $0x1c8] sm:$0xff]   ;;  %v1400_v50 = vld [vmem:[#allocation5 + $0x110] sm:$0xff]  }
  0x36   :  { %1202 = vmatpush3.bf16.msra.mxu0 %v1372_v14  ;;  %752 = vmatprep.mubr.bf16.mxu1 %v1104_v39  ;;  %v1393_v43 = vld [vmem:[#allocation5 + $0x180] sm:$0xff]   ;;  %v1396_v46 = vld [vmem:[#allocation5 + $0x108] sm:$0xff]   ;;  %v1401_v51 = vld [vmem:[#allocation5 + $0x190] sm:$0xff]  }
  0x37   :  { %1230 = vmatpush3.bf16.msra.mxu1 %v1373_v15  ;;  %1203 = vmatprep.subr.bf16.mxu0 %v1374_v16  ;;  %v1397_v47 = vld [vmem:[#allocation5 + $0x188] sm:$0xff]   ;;  %v1402_v52 = vld [vmem:[#allocation5 + $0x158] sm:$0xff]   ;;  %v1406_v56 = vld [vmem:[#allocation5 + $0x160] sm:$0xff]  }
  0x38   :  { %1231 = vmatprep.subr.bf16.mxu1 %v1375_v17  ;;  %v1403_v53 = vld [vmem:[#allocation5 + $0x1d8] sm:$0xff]   ;;  %v1407_v57 = vld [vmem:[#allocation5 + $0x1e0] sm:$0xff]   ;;  %v1410_v63 = vld [vmem:[#allocation5 + $0x168] sm:$0xff]  }
  0x39   :  { %v1404_v54 = vld [vmem:[#allocation5 + $0x118] sm:$0xff]   ;;  %v1408_v58 = vld [vmem:[#allocation5 + $0x120] sm:$0xff]   ;;  %v1411_v1 = vld [vmem:[#allocation5 + $0x1e8] sm:$0xff]  }
  0x3a   :  { %1204 = vmatpush3.bf16.msra.mxu0 %v1376_v18  ;;  %v1405_v55 = vld [vmem:[#allocation5 + $0x198] sm:$0xff]   ;;  %v1409_v59 = vld [vmem:[#allocation5 + $0x1a0] sm:$0xff]   ;;  %v1412_v2 = vld [vmem:[#allocation5 + $0x128] sm:$0xff]  }
  0x3b   :  { %1232 = vmatpush3.bf16.msra.mxu1 %v1377_v19  ;;  %1205 = vmatprep.subr.bf16.mxu0 %v1378_v20  ;;  %v64_v60 = vld [vmem:[#allocation2 + $0x40] sm:$0xff]  ;;  %v1413_v3 = vld [vmem:[#allocation5 + $0x1a8] sm:$0xff]   ;;  %v1414_v8 = vld [vmem:[#allocation5 + $0x170] sm:$0xff]  }
  0x3c   :  { %1233 = vmatprep.subr.bf16.mxu1 %v1379_v21  ;;  %v68_v61 = vld [vmem:[#allocation2 + $0x60] sm:$0xff]  ;;  %v65_v4 = vld [vmem:[#allocation2 + $0x48] sm:$0xff]  ;;  %v1415_v9 = vld [vmem:[#allocation5 + $0x1f0] sm:$0xff]  }
  0x3d   :  { %v1110_v62 = vcombine.high %v64_v60, %v68_v61  ;;  %v1109_v0 = vcombine.low %v64_v60, %v68_v61  ;;  %v69_v5 = vld [vmem:[#allocation2 + $0x68] sm:$0xff]  ;;  %v1416_v10 = vld [vmem:[#allocation5 + $0x130] sm:$0xff]   ;;  %v1418_v12 = vld [vmem:[#allocation5 + $0x178] sm:$0xff]  }
  0x3e   :  { %1206 = vmatpush3.bf16.msra.mxu0 %v1380_v22  ;;  %v1112_v6 = vcombine.high %v65_v4, %v69_v5  ;;  %v1111_v7 = vcombine.low %v65_v4, %v69_v5  ;;  %v1417_v11 = vld [vmem:[#allocation5 + $0x1b0] sm:$0xff]   ;;  %v1419_v13 = vld [vmem:[#allocation5 + $0x1f8] sm:$0xff]   ;;  %v1422_v32 = vld [vmem:[%s1631_s3] sm:$0xff]  }
  0x3f   :  { %1234 = vmatpush3.bf16.msra.mxu1 %v1381_v23  ;;  %1207 = vmatprep.subr.bf16.mxu0 %v1382_v24  ;;  %v1420_v14 = vld [vmem:[#allocation5 + $0x138] sm:$0xff]   ;;  %v58_v16 = vld [vmem:[#allocation2 + $0x10] sm:$0xff]  ;;  %v1423_v33 = vld [vmem:[%s1631_s3 + $0x8] sm:$0xff]  }
  0x40   :  { %1235 = vmatprep.subr.bf16.mxu1 %v1383_v25  ;;  %v1421_v15 = vld [vmem:[#allocation5 + $0x1b8] sm:$0xff]   ;;  %v62_v17 = vld [vmem:[#allocation2 + $0x30] sm:$0xff]  ;;  %v1426_v36 = vld [vmem:[%s1631_s3 + $0x20] sm:$0xff]  }
  0x41   :  { %v59_v18 = vld [vmem:[#allocation2 + $0x18] sm:$0xff]  ;;  %v1105_v20 = vcombine.low %v58_v16, %v62_v17  ;;  %v1106_v21 = vcombine.high %v58_v16, %v62_v17  ;;  %v66_v24 = vld [vmem:[#allocation2 + $0x50] sm:$0xff]  ;;  %v1427_v37 = vld [vmem:[%s1631_s3 + $0x28] sm:$0xff]  }
  0x42   :  { %1208 = vmatpush3.bf16.msra.mxu0 %v1384_v26  ;;  %v63_v19 = vld [vmem:[#allocation2 + $0x38] sm:$0xff]  ;;  %v70_v25 = vld [vmem:[#allocation2 + $0x70] sm:$0xff] }
  0x43   :  { %1236 = vmatpush3.bf16.msra.mxu1 %v1385_v27  ;;  %1209 = vmatprep.subr.bf16.mxu0 %v1386_v28  ;;  %v1107_v22 = vcombine.low %v59_v18, %v63_v19  ;;  %v1108_v23 = vcombine.high %v59_v18, %v63_v19  ;;  %v67_v26 = vld [vmem:[#allocation2 + $0x58] sm:$0xff]  ;;  %v1114_v27 = vcombine.high %v66_v24, %v70_v25  ;;  %v1424_v34 = vld [vmem:[%s1631_s3 + $0x10] sm:$0xff]  }
  0x44   :  { %1237 = vmatprep.subr.bf16.mxu1 %v1387_v29  ;;  %v71_v28 = vld [vmem:[#allocation2 + $0x78] sm:$0xff] }
  0x45   :  { %v1116_v29 = vcombine.high %v67_v26, %v71_v28  ;;  %v1429_v39 = vld [vmem:[%s1631_s3 + $0x38] sm:$0xff]  }
  0x46   :  { %1210 = vmatpush3.bf16.msra.mxu0 %v1388_v30  ;;  %v1113_v30 = vcombine.low %v66_v24, %v70_v25 }
  0x47   :  { %1238 = vmatpush3.bf16.msra.mxu1 %v1389_v31  ;;  %1251 = vmatprep.subr.bf16.mxu0 %v1390_v40  ;;  %v1115_v31 = vcombine.low %v67_v26, %v71_v28  ;;  %v1430_v40 = vld [vmem:[%s1633_s5] sm:$0xff]  }
  0x48   :  { %1279 = vmatprep.subr.bf16.mxu1 %v1391_v41 }
  0x49   :  { %704 = vmatmul.mubr.bf16.vlgmr.msra.gmra.mrb[0].mxu0 %v1101_v35  ;;  %v1425_v35 = vld [vmem:[%s1631_s3 + $0x18] sm:$0xff]  }
  0x4a   :  { %753 = vmatmul.mubr.bf16.vlgmr.msra.gmra.mrb[0].mxu1 %v1103_v38  ;;  %1252 = vmatpush3.bf16.msra.mxu0 %v1392_v42  ;;  %v1428_v38 = vld [vmem:[%s1631_s3 + $0x30] sm:$0xff]  }
  0x4b   :  { %1280 = vmatpush3.bf16.msra.mxu1 %v1393_v43  ;;  %1253 = vmatprep.subr.bf16.mxu0 %v1394_v44  ;;  %v1100_v43 = vld [vmem:[%s1630_s2] ss:$0 sm:$0xff] }
  0x4c   :  { %1281 = vmatprep.subr.bf16.mxu1 %v1395_v45  ;;  %711 = vmatprep.mubr.bf16.mxu0 %v1110_v62 }
  0x4d   :  { %760 = vmatprep.mubr.bf16.mxu1 %v1112_v6 }
  0x4e   :  { %1254 = vmatpush3.bf16.msra.mxu0 %v1396_v46 }
  0x4f   :  { %1282 = vmatpush3.bf16.msra.mxu1 %v1397_v47  ;;  %1255 = vmatprep.subr.bf16.mxu0 %v1398_v48 }
  0x50   :  { %1283 = vmatprep.subr.bf16.mxu1 %v1399_v49 }
  0x51   :  { %712 = vmatmul.mubr.bf16.gmra.mrb[4].mxu0 %v1109_v0 }
  0x52   :  { %1256 = vmatpush3.bf16.msra.mxu0 %v1400_v50  ;;  %761 = vmatmul.mubr.bf16.gmra.mrb[4].mxu1 %v1111_v7 }
  0x53   :  { %1284 = vmatpush3.bf16.msra.mxu1 %v1401_v51  ;;  %1257 = vmatprep.subr.bf16.mxu0 %v1402_v52 }
  0x54   :  { %1285 = vmatprep.subr.bf16.mxu1 %v1403_v53  ;;  %801 = vmatprep.mubr.bf16.mxu0 %v1106_v21 }
  0x55   :  { %850 = vmatprep.mubr.bf16.mxu1 %v1108_v23 }
  0x56   :  { %1258 = vmatpush3.bf16.msra.mxu0 %v1404_v54 }
  0x57   :  { %1286 = vmatpush3.bf16.msra.mxu1 %v1405_v55  ;;  %1259 = vmatprep.subr.bf16.mxu0 %v1406_v56 }
  0x58   :  { %1287 = vmatprep.subr.bf16.mxu1 %v1407_v57 }
  0x5a   :  { %1260 = vmatpush3.bf16.msra.mxu0 %v1408_v58 }
  0x5b   :  { %1288 = vmatpush3.bf16.msra.mxu1 %v1409_v59  ;;  %1261 = vmatprep.subr.bf16.mxu0 %v1410_v63 }
  0x5c   :  { %1289 = vmatprep.subr.bf16.mxu1 %v1411_v1 }
  0x5e   :  { %1262 = vmatpush3.bf16.msra.mxu0 %v1412_v2 }
  0x5f   :  { %1290 = vmatpush3.bf16.msra.mxu1 %v1413_v3  ;;  %1263 = vmatprep.subr.bf16.mxu0 %v1414_v8 }
  0x60   :  { %1291 = vmatprep.subr.bf16.mxu1 %v1415_v9 }
  0x62   :  { %1264 = vmatpush3.bf16.msra.mxu0 %v1416_v10 }
  0x63   :  { %1292 = vmatpush3.bf16.msra.mxu1 %v1417_v11  ;;  %1265 = vmatprep.subr.bf16.mxu0 %v1418_v12 }
  0x64   :  { %1293 = vmatprep.subr.bf16.mxu1 %v1419_v13 }
  0x66   :  { %1266 = vmatpush3.bf16.msra.mxu0 %v1420_v14 }
  0x67   :  { %1294 = vmatpush3.bf16.msra.mxu1 %v1421_v15  ;;  %1321 = vmatprep.subr.bf16.mxu0 %v1422_v32 }
  0x68   :  { %1341 = vmatprep.subr.bf16.mxu1 %v1430_v40 }
  0x69   :  { %802 = vmatmul.mubr.bf16.vlgmr.msra.gmra.mrb[8].mxu0 %v1105_v20 }
  0x6a   :  { %851 = vmatmul.mubr.bf16.vlgmr.msra.gmra.mrb[8].mxu1 %v1107_v22  ;;  %809 = vmatprep.mubr.bf16.mxu0 %v1114_v27 }
  0x6b   :  { %858 = vmatprep.mubr.bf16.mxu1 %v1116_v29  ;;  %1322 = vmatpush3.bf16.msra.mxu0 %v1422_v32 }
  0x6c   :  { %1323 = vmatprep.subr.bf16.mxu0 %v1423_v33  ;;  %1342 = vmatpush3.bf16.msra.mxu1 %v1430_v40 }
  0x6f   :  { %1324 = vmatpush3.bf16.msra.mxu0 %v1423_v33 }
  0x70   :  { %1325 = vmatprep.subr.bf16.mxu0 %v1424_v34 }
  0x71   :  { %810 = vmatmul.mubr.bf16.gmra.mrb[12].mxu0 %v1113_v30 }
  0x72   :  { %859 = vmatmul.mubr.bf16.gmra.mrb[12].mxu1 %v1115_v31 }
  0x73   :  { %1326 = vmatpush3.bf16.msra.mxu0 %v1424_v34 }
  0x74   :  { %1327 = vmatprep.subr.bf16.mxu0 %v1425_v35 }
  0x77   :  { %1328 = vmatpush3.bf16.msra.mxu0 %v1425_v35 }
  0x78   :  { %1329 = vmatprep.subr.bf16.mxu0 %v1426_v36 }
  0x7b   :  { %1330 = vmatpush3.bf16.msra.mxu0 %v1426_v36 }
  0x7c   :  { %1331 = vmatprep.subr.bf16.mxu0 %v1427_v37 }
  0x7f   :  { %1332 = vmatpush3.bf16.msra.mxu0 %v1427_v37 }
  0x80   :  { %1333 = vmatprep.subr.bf16.mxu0 %v1428_v38 }
  0x83   :  { %1334 = vmatpush3.bf16.msra.mxu0 %v1428_v38 }
  0x84   :  { %1335 = vmatprep.subr.bf16.mxu0 %v1429_v39 }
  0x87   :  { %1336 = vmatpush3.bf16.msra.mxu0 %v1429_v39 }
 0x11c   :  { %v1211_v41 = vpop.f32.mrb[0].mxu0 }
 0x11d   :  { %v1239_v42 = vpop.f32.mrb[0].mxu1  ;;  %v1212_v44 = vpop.f32.mrb[1].mxu0 }
 0x11e   :  { %v1213_v45 = vadd.f32 %v1212_v44, %v1211_v41  ;;  %v1240_v46 = vpop.f32.mrb[1].mxu1  ;;  %v1214_v47 = vpop.f32.mrb[2].mxu0 }
 0x11f   :  { %v1241_v48 = vadd.f32 %v1240_v46, %v1239_v42  ;;  %v1242_v49 = vpop.f32.mrb[2].mxu1  ;;  %v1215_v50 = vpop.f32.mrb[3].mxu0 }
 0x120   :  { %v706_v51 = vadd.f32 %v1213_v45, %v1100_v43  ;;  %v1216_v52 = vadd.f32 %v1215_v50, %v1214_v47  ;;  %v1243_v53 = vpop.f32.mrb[3].mxu1 }
 0x121   :  { %v1244_v54 = vadd.f32 %v1243_v53, %v1242_v49  ;;  %v1181_v49 = vld [vmem:[%s1632_s4] ss:$0 sm:$0xff]  ;;  %s1510_s4 = smov [#allocation7]  }
 0x122   :  { %v755_v55 = vadd.f32 %v1241_v48, %v706_v51  ;;  %v709_v56 = vadd.f32 %v1216_v52, %v1100_v43  ;;  %v1431_v48 = vld [vmem:[%s1633_s5 + $0x8] sm:$0xff]   ;;  %s1087_s26 = sshll.u32 %s1510_s4, 4  ;;  %s1088_s26 = int_to_ptr.vmem [resolvable:$true] %s1087_s26 }
 0x123   :  { %1343 = vmatprep.subr.bf16.mxu1 %v1431_v48  ;;  %s1476_s27 = scalar_lea.vmem %s1088_s26, 512  ;;  %p1481_p3 = scmp.lt.s32.totalorder %s1088_s26, %s1088_s26 }
 0x124   :  { %v758_v57 = vadd.f32 %v1244_v54, %v709_v56  ;;  %v1217_v58 = vpop.f32.mrb[4].mxu0  ;;  %1344 = vmatpush3.bf16.msra.mxu1 %v1431_v48  ;;  %p1477_p2 = scmp.ne.s32.totalorder %s1088_s26, %s1476_s27  ;;  %p1482_p4 = scmp.lt.s32.totalorder %s1476_s27, %s1476_s27 }
 0x125   :  { %v1218_v59 = vpop.f32.mrb[5].mxu0  ;;  %v1245_v1 = vpop.f32.mrb[4].mxu1 }
 0x126   :  { %v1219_v60 = vadd.f32 %v1218_v59, %v1217_v58  ;;  %v1220_v61 = vpop.f32.mrb[6].mxu0  ;;  %v1246_v2 = vpop.f32.mrb[5].mxu1  ;;  %p1483_p5 = por %p1482_p4, %p1481_p3 }
 0x127   :  { %v1221_v62 = vpop.f32.mrb[7].mxu0  ;;  %v1247_v4 = vadd.f32 %v1246_v2, %v1245_v1  ;;  %v1248_v5 = vpop.f32.mrb[6].mxu1 }
 0x128   :  { %v1222_v63 = vadd.f32 %v1221_v62, %v1220_v61  ;;  %v714_v0 = vadd.f32 %v1219_v60, %v1100_v43  ;;  %v1249_v6 = vpop.f32.mrb[7].mxu1  ;;  %p1484_p6 = pnand %p1483_p5, %p1477_p2 }
 0x129   :  { %v1250_v8 = vadd.f32 %v1249_v6, %v1248_v5 }
 0x12a   :  { %v717_v3 = vadd.f32 %v1222_v63, %v1100_v43  ;;  %v763_v7 = vadd.f32 %v1247_v4, %v714_v0  ;;  %v1190_v0 = vld [vmem:[%s1634_s6] ss:$0 sm:$0xff] }
 0x12c   :  { %v766_v9 = vadd.f32 %v1250_v8, %v717_v3 }
 0x13c   :  { %v1267_v10 = vpop.f32.mrb[8].mxu0 }
 0x13d   :  { %v1295_v11 = vpop.f32.mrb[8].mxu1  ;;  %v1268_v12 = vpop.f32.mrb[9].mxu0 }
 0x13e   :  { %v1296_v13 = vpop.f32.mrb[9].mxu1  ;;  %v1269_v14 = vadd.f32 %v1268_v12, %v1267_v10  ;;  %v1270_v16 = vpop.f32.mrb[10].mxu0 }
 0x13f   :  { %v1297_v15 = vadd.f32 %v1296_v13, %v1295_v11  ;;  %v1298_v17 = vpop.f32.mrb[10].mxu1  ;;  %v1271_v18 = vpop.f32.mrb[11].mxu0 }
 0x140   :  { %v1299_v19 = vpop.f32.mrb[11].mxu1  ;;  %v804_v20 = vadd.f32 %v1269_v14, %v755_v55  ;;  %v1272_v21 = vadd.f32 %v1271_v18, %v1270_v16 }
 0x141   :  { %v1300_v22 = vadd.f32 %v1299_v19, %v1298_v17 }
 0x142   :  { %v853_v23 = vadd.f32 %v1297_v15, %v804_v20  ;;  %v807_v24 = vadd.f32 %v1272_v21, %v758_v57 }
 0x144   :  { %v856_v25 = vadd.f32 %v1300_v22, %v807_v24  ;;  %v1273_v26 = vpop.f32.mrb[12].mxu0  ;;  %v867_v30 = vmax.f32 %v853_v23, 0.0 }
 0x145   :  { %v1301_v27 = vpop.f32.mrb[12].mxu1  ;;  %v1274_v28 = vpop.f32.mrb[13].mxu0 }
 0x146   :  { %v1302_v29 = vpop.f32.mrb[13].mxu1  ;;  %v868_v31 = vmax.f32 %v856_v25, 0.0  ;;  %v1275_v32 = vadd.f32 %v1274_v28, %v1273_v26  ;;  %v1276_v34 = vpop.f32.mrb[14].mxu0 }
 0x147   :  { %v1303_v33 = vadd.f32 %v1302_v29, %v1301_v27  ;;  %v1304_v35 = vpop.f32.mrb[14].mxu1  ;;  %v1277_v36 = vpop.f32.mrb[15].mxu0 }
 0x148   :  { %v1305_v37 = vpop.f32.mrb[15].mxu1  ;;  %v812_v38 = vadd.f32 %v1275_v32, %v763_v7  ;;  %v1278_v39 = vadd.f32 %v1277_v36, %v1276_v34  ;;  %v871_v41 = vpack.c.bf16 %v868_v31, %v867_v30 }
 0x149   :  { %v1306_v40 = vadd.f32 %v1305_v37, %v1304_v35 }
 0x14a   :  { %v861_v42 = vadd.f32 %v1303_v33, %v812_v38  ;;  %v815_v43 = vadd.f32 %v1278_v39, %v766_v9  ;;  %1337 = vmatprep.mubr.bf16.mxu0 %v871_v41 }
 0x14c   :  { %v864_v44 = vadd.f32 %v1306_v40, %v815_v43  ;;  %v869_v45 = vmax.f32 %v861_v42, 0.0 }
 0x14e   :  { %v870_v46 = vmax.f32 %v864_v44, 0.0 }
 0x150   :  { %v872_v47 = vpack.c.bf16 %v870_v46, %v869_v45 }
 0x152   :  { %1338 = vmatmul.mubr.bf16.vlgmr.msra.gmra.mrb[16].mxu0 %v872_v47 }
 0x225   :  { %v1339_v50 = vpop.f32.mrb[16].mxu0 }
 0x226   :  { %v987_v51 = vadd.f32 %v1339_v50, %v1181_v49  ;;  %v978_v52 = vpop.f32.mrb[17].mxu0 }
 0x227   :  { %v979_v53 = vadd.f32 %v1181_v49, %v978_v52  ;;  %v1340_v54 = vpop.f32.mrb[18].mxu0 }
 0x228   :  { %v990_v55 = vadd.f32 %v1340_v54, %v1181_v49  ;;  %v981_v56 = vpop.f32.mrb[19].mxu0  ;;  %v995_v58 = vmax.f32 %v987_v51, 0.0 }
 0x229   :  { %v982_v57 = vadd.f32 %v1181_v49, %v981_v56  ;;  %v993_v60 = vmax.f32 %v979_v53, 0.0 }
 0x22a   :  { %v996_v59 = vmax.f32 %v990_v55, 0.0 }
 0x22b   :  { %v994_v61 = vmax.f32 %v982_v57, 0.0 }
 0x22c   :  { %v998_v62 = vpack.c.bf16 %v996_v59, %v995_v58 }
 0x22d   :  { %v997_v63 = vpack.c.bf16 %v994_v61, %v993_v60 }
 0x22f   :  { %1345 = vmatprep.mubr.msk.bf16.mxu1 %vm1022_vm0, %v997_v63 }
 0x230   :  { %1346 = vmatmul.mubr.msk.bf16.vlgmr.msra.gmra.mrb[16].mxu1 %vm1022_vm0, %v998_v62 }
 0x303   :  { %v1347_v1 = vpop.f32.mrb[16].mxu1 }
 0x304   :  { %v1072_v2 = vadd.f32 %v1347_v1, %v1190_v0  ;;  %v1063_v3 = vpop.f32.mrb[17].mxu1 }
 0x305   :  { %v1064_v4 = vadd.f32 %v1190_v0, %v1063_v3  ;;  %v1348_v5 = vpop.f32.mrb[18].mxu1 }
 0x306   :  { %1080 = vst [vmem:[#allocation7 + $0x10] sm:$0xff] %v1072_v2  ;;  %v1075_v6 = vadd.f32 %v1348_v5, %v1190_v0  ;;  %v1066_v7 = vpop.f32.mrb[19].mxu1 }
 0x307   :  { %1078 = vst [vmem:[#allocation7] sm:$0xff] %v1064_v4  ;;  %v1067_v8 = vadd.f32 %v1190_v0, %v1066_v7 }
 0x308   :  { %1081 = vst [vmem:[#allocation7 + $0x18] sm:$0xff] %v1075_v6 }
 0x309   :  { %1079 = vst [vmem:[#allocation7 + $0x8] sm:$0xff] %v1067_v8 }
 0x30a   :  { %1487 = shalt.err (!%p1484_p6)
}
 0x30b   :  { %s1488_s28 = scalar_lea.hbm %s1635_s7, 512 }
 0x30c   :  { %p1489_p7 = scmp.ne.s32.totalorder %s1635_s7, %s1488_s28  ;;  %p1492_p8 = scmp.lt.u32.totalorder %s1488_s28, %s1635_s7 }
 0x30e   :  { %p1494_p9 = pnand %p1492_p8, %p1489_p7 }
 0x310   :  { %1497 = shalt.err (!%p1494_p9)
}
 0x311   :  { %s1511_s10 = smov 128   ;;  %s1512_s11 = smov 8  }
 0x312   :  { %1093 = dma.vmem_to_hbm [thread:$0]  %s1088_s26, 512, %s1635_s7, [#allocation4], %s1511_s10, %s1511_s10, %s1512_s11  }
 0x313   :  { %1502 = dma.done.wait [#allocation4], 512  }
 0x314   :  { %1503 = vsyncadd [#allocation4], 4294966784 }
 0x315   :  { %1097 = vsyncpa [#allocation3], 1 }
 0x316   :  { %1098 = vsyncpa [#allocation6], 1 }
 0x317   :  { %1099 = vsyncpa [#allocation4], 1 }

</bundles_post_ra>
